<compile_context>
chip_gen: v5e
topology: v5e:2x2
jax: 0.10.0
libtpu: 0.0.40
codegen_flags: <defaults>
</compile_context>

<pallas_src>
import functools
import math

import jax
import jax.numpy as jnp
from jax.experimental import pallas as pl
from jax.experimental.pallas import tpu as pltpu


# ---------------------------------------------------------------------------
# Kernel 1: fused QKV projection (x @ [Wq|Wk|Wv]), scale folded into q.
# ---------------------------------------------------------------------------
def _qkv_proj_kernel(x_ref, w_ref, q_ref, k_ref, v_ref, *, d_out, scale,
                     compute_dtype):
    x = x_ref[0].astype(compute_dtype)            # (tm, d_in)
    w = w_ref[...]                                # (d_in, 3*d_out), compute_dtype
    qkv = jnp.dot(x, w, preferred_element_type=jnp.float32)   # (tm, 3*d_out) f32
    # TODO(synk): for d_out not a multiple of 128 (spec uses d_out=2) these
    # column slices / stores are not lane-dense; production configs should use
    # d_out % 128 == 0 (exercised by the larger test below).
    q_ref[0] = (qkv[:, 0 * d_out:1 * d_out] * scale).astype(q_ref.dtype)
    k_ref[0] = qkv[:, 1 * d_out:2 * d_out].astype(k_ref.dtype)
    v_ref[0] = qkv[:, 2 * d_out:3 * d_out].astype(v_ref.dtype)


# ---------------------------------------------------------------------------
# Kernel 2: flash-style causal attention (online softmax, tiled over sequence).
# ---------------------------------------------------------------------------
def _attn_tile_update(q_ref, k_ref, v_ref, m_sc, l_sc, acc_sc, *,
                      q_start, k_start, tq, tk, compute_dtype, masked):
    q = q_ref[0].astype(compute_dtype)        # (tq, d_out), scale pre-folded
    k = k_ref[0].astype(compute_dtype)        # (tk, d_out)
    v = v_ref[0].astype(compute_dtype)        # (tk, d_out)

    # scores tile: (tq, tk) = q @ k^T, f32 accumulation on the MXU.
    s = jax.lax.dot_general(q, k, (((1,), (1,)), ((), ())),
                            preferred_element_type=jnp.float32)

    if masked:
        # Only diagonal-straddling tiles pay for the iota/compare/select (VPU).
        row = q_start + jax.lax.broadcasted_iota(jnp.int32, (tq, tk), 0)
        col = k_start + jax.lax.broadcasted_iota(jnp.int32, (tq, tk), 1)
        s = jnp.where(col > row, -jnp.inf, s)

    m_prev = m_sc[...]                                        # (tq, 1)
    m_new = jnp.maximum(m_prev, jnp.max(s, axis=-1, keepdims=True))
    # NaN-safety note: kv tile ki=0 always contains column 0 <= row, so m_new is
    # finite the first time each q row is updated (no exp(-inf - (-inf))).
    alpha = jnp.exp(m_prev - m_new)                           # (tq, 1)
    p = jnp.exp(s - m_new)                                    # (tq, tk) f32

    l_sc[...] = alpha * l_sc[...] + jnp.sum(p, axis=-1, keepdims=True)
    pv = jnp.dot(p.astype(compute_dtype), v,
                 preferred_element_type=jnp.float32)          # (tq, d_out)
    acc_sc[...] = alpha * acc_sc[...] + pv
    m_sc[...] = m_new


def _flash_attn_kernel(q_ref, k_ref, v_ref, o_ref, m_sc, l_sc, acc_sc, *,
                       tq, tk, compute_dtype, approx_reciprocal):
    qi = pl.program_id(1)
    ki = pl.program_id(2)
    q_start = qi * tq
    k_start = ki * tk

    @pl.when(ki == 0)
    def _init():
        m_sc[...] = jnp.full_like(m_sc, -jnp.inf)
        l_sc[...] = jnp.zeros_like(l_sc)
        acc_sc[...] = jnp.zeros_like(acc_sc)

    in_range = k_start <= q_start + (tq - 1)      # tile not fully above diagonal
    on_diag = k_start + (tk - 1) > q_start        # tile straddles the diagonal

    update = functools.partial(
        _attn_tile_update, q_ref, k_ref, v_ref, m_sc, l_sc, acc_sc,
        q_start=q_start, k_start=k_start, tq=tq, tk=tk,
        compute_dtype=compute_dtype)

    @pl.when(jnp.logical_and(in_range, on_diag))
    def _compute_masked():
        update(masked=True)

    @pl.when(jnp.logical_and(in_range, jnp.logical_not(on_diag)))
    def _compute_unmasked():
        update(masked=False)

    @pl.when(ki == pl.num_programs(2) - 1)
    def _finalize():
        # TODO(synk): nn.Dropout on attention weights is identity in eval / p=0.0;
        # training-mode dropout is not applied here.
        inv_l = pl.reciprocal(l_sc[...], approx=approx_reciprocal)
        o_ref[0] = (acc_sc[...] * inv_l).astype(o_ref.dtype)


# ---------------------------------------------------------------------------
# Host-side wrapper.
# ---------------------------------------------------------------------------
def _pick_tile(t, max_tile):
    """Largest tile <= max_tile that divides t and is a multiple of 8 (sublane
    rule), or the full extent t when t itself fits."""
    if t <= max_tile:
        return t
    for cand in (1024, 512, 256, 128, 64, 32, 16, 8):
        if cand <= max_tile and t % cand == 0:
            return cand
    return t


def _vmem_limit_bytes():
    """~75% of the chip's physical VMEM, capped at 100 MiB.

    -> ~96 MiB on v5e/v6e (128 MiB physical), ~48 MiB on v7x (64 MiB per TC).
    Falls back to a conservative 48 MiB if the query is unavailable.
    """
    cap = 64 * 1024 * 1024
    try:
        cap = int(pltpu.get_tpu_info().vmem_capacity_bytes)
    except Exception:
        pass
    return min(cap * 3 // 4, 100 * 1024 * 1024)


def causal_attention(x, w_query, w_key, w_value, *,
                     compute_dtype=jnp.bfloat16, q_tile=None, kv_tile=None,
                     approx_reciprocal=True):
    """x: (B, T, d_in); w_*: (d_in, d_out). Returns (B, T, d_out) in x.dtype."""
    B, T, d_in = x.shape
    d_out = w_query.shape[1]
    scale = 1.0 / math.sqrt(d_out)
    vmem_limit = _vmem_limit_bytes()

    # --- fused QKV projection -------------------------------------------------
    # Cast the fused weight to compute_dtype on the host (bf16 halves the
    # resident VMEM block and its HBM read).
    w_qkv = jnp.concatenate([w_query, w_key, w_value], axis=1).astype(compute_dtype)
    tm = _pick_tile(T, 1024)        # large row tile: projection is mem-bound
    assert T % tm == 0

    proj = pl.pallas_call(
        functools.partial(_qkv_proj_kernel, d_out=d_out, scale=scale,
                          compute_dtype=compute_dtype),
        out_shape=tuple(jax.ShapeDtypeStruct((B, T, d_out), compute_dtype)
                        for _ in range(3)),
        grid_spec=pltpu.PrefetchScalarGridSpec(
            num_scalar_prefetch=0,
            grid=(B, T // tm),
            in_specs=[
                pl.BlockSpec((1, tm, d_in), lambda b, i: (b, i, 0)),
                pl.BlockSpec((d_in, 3 * d_out), lambda b, i: (0, 0)),
            ],
            out_specs=[pl.BlockSpec((1, tm, d_out), lambda b, i: (b, i, 0))
                       for _ in range(3)],
        ),
        compiler_params=pltpu.CompilerParams(
            dimension_semantics=("parallel", "parallel"),
            vmem_limit_bytes=vmem_limit),
    )
    q, k, v = proj(x, w_qkv)

    # --- tiled causal attention (flash / online softmax) ----------------------
    # Big tiles (up to 512): 4x fewer K/V re-reads than 128-tiles, fewer grid
    # steps, and >=256-wide dots to fill the 2x256^2 MXU on v6e/v7x.
    tq = q_tile if q_tile is not None else _pick_tile(T, 512)
    tk = kv_tile if kv_tile is not None else _pick_tile(T, 512)
    if q_tile is None:
        # Keep at least 2 parallel work units (B * nq) so v7x's 2 TensorCores
        # both get work after enlarging tq.
        while (B * (T // tq) < 2 and tq % 2 == 0 and T % (tq // 2) == 0
               and (tq // 2) % 8 == 0):
            tq //= 2
    assert T % tq == 0 and T % tk == 0
    nq, nk = T // tq, T // tk

    def _q_map(b, qi, ki):
        return (b, qi, 0)

    def _kv_map(b, qi, ki):
        # Clamp fully-masked (above-diagonal) kv tiles to the diagonal tile:
        # the revisited block issues no new DMA, and compute is skipped in-kernel.
        last_valid = (qi * tq + (tq - 1)) // tk
        return (b, jnp.minimum(ki, last_valid), 0)

    attn = pl.pallas_call(
        functools.partial(_flash_attn_kernel, tq=tq, tk=tk,
                          compute_dtype=compute_dtype,
                          approx_reciprocal=approx_reciprocal),
        out_shape=jax.ShapeDtypeStruct((B, T, d_out), x.dtype),
        grid_spec=pltpu.PrefetchScalarGridSpec(
            num_scalar_prefetch=0,
            grid=(B, nq, nk),
            in_specs=[
                pl.BlockSpec((1, tq, d_out), _q_map),
                pl.BlockSpec((1, tk, d_out), _kv_map),
                pl.BlockSpec((1, tk, d_out), _kv_map),
            ],
            out_specs=pl.BlockSpec((1, tq, d_out), _q_map),
            scratch_shapes=[
                pltpu.VMEM((tq, 1), jnp.float32),       # running max m
                pltpu.VMEM((tq, 1), jnp.float32),       # running sum l
                pltpu.VMEM((tq, d_out), jnp.float32),   # output accumulator
            ],
        ),
        compiler_params=pltpu.CompilerParams(
            dimension_semantics=("parallel", "parallel", "arbitrary"),
            vmem_limit_bytes=vmem_limit),
    )
    return attn(q, k, v)


# ---------------------------------------------------------------------------
# Pure-JAX reference (matches the PyTorch module forward, eval mode).
# ---------------------------------------------------------------------------
def reference_causal_attention(x, w_query, w_key, w_value):
    with jax.default_matmul_precision("highest"):
        q = x @ w_query
        k = x @ w_key
        v = x @ w_value
        scores = jnp.einsum("btd,bsd->bts", q, k)
        T = x.shape[1]
        mask = jnp.triu(jnp.ones((T, T), dtype=bool), k=1)
        scores = jnp.where(mask[None], -jnp.inf, scores)
        weights = jax.nn.softmax(scores / math.sqrt(w_key.shape[1]), axis=-1)
        return weights @ v


if __name__ == "__main__":
    # --- Spec-sized test: batch of 2 copies of the 6x3 embedding, d_out=2 ----
    inputs = jnp.array(
        [[0.43, 0.15, 0.89],
         [0.55, 0.87, 0.66],
         [0.57, 0.85, 0.64],
         [0.22, 0.58, 0.33],
         [0.77, 0.25, 0.10],
         [0.05, 0.80, 0.55]],
        dtype=jnp.float32,
    )
    batch = jnp.stack([inputs, inputs], axis=0)      # (2, 6, 3)

    d_in = inputs.shape[1]   # 3
    d_out = 2

    key = jax.random.PRNGKey(0)
    kq, kk, kv = jax.random.split(key, 3)
    bound = 1.0 / math.sqrt(d_in)
    w_query = jax.random.uniform(kq, (d_in, d_out), jnp.float32, -bound, bound)
    w_key = jax.random.uniform(kk, (d_in, d_out), jnp.float32, -bound, bound)
    w_value = jax.random.uniform(kv, (d_in, d_out), jnp.float32, -bound, bound)

    ref = reference_causal_attention(batch, w_query, w_key, w_value)

    # fp32 compute path, exact reciprocal: tight tolerance vs highest-precision ref.
    out_f32 = jax.block_until_ready(
        causal_attention(batch, w_query, w_key, w_value,
                         compute_dtype=jnp.float32, approx_reciprocal=False))
    assert out_f32.shape == (2, 6, d_out)
    assert jnp.allclose(out_f32, ref, atol=2e-3, rtol=2e-3)

    # bf16-MXU production default (approx EUP reciprocal): looser tolerance.
    out_bf16 = jax.block_until_ready(
        causal_attention(batch, w_query, w_key, w_value))
    assert jnp.allclose(out_bf16, ref, atol=3e-2, rtol=3e-2)

    # --- Larger config exercising the tiled flash path ------------------------
    # B=2, T=1024 -> 2x2 q/kv tiles of 512: the above-diagonal tile's K/V DMA is
    # clamped away, diagonal tiles take the masked branch, below-diagonal tiles
    # the unmasked branch.  d_out=128 gives lane-dense stores.
    B2, T2, din2, dout2 = 2, 1024, 64, 128
    k1, k2, k3, k4 = jax.random.split(jax.random.PRNGKey(0), 4)
    x2 = jax.random.normal(k1, (B2, T2, din2), jnp.float32) * 0.1
    b2 = 1.0 / math.sqrt(din2)
    wq2 = jax.random.uniform(k2, (din2, dout2), jnp.float32, -b2, b2)
    wk2 = jax.random.uniform(k3, (din2, dout2), jnp.float32, -b2, b2)
    wv2 = jax.random.uniform(k4, (din2, dout2), jnp.float32, -b2, b2)

    ref2 = reference_causal_attention(x2, wq2, wk2, wv2)

    out2_f32 = jax.block_until_ready(
        causal_attention(x2, wq2, wk2, wv2, compute_dtype=jnp.float32))
    assert out2_f32.shape == (B2, T2, dout2)
    assert jnp.allclose(out2_f32, ref2, atol=2e-3, rtol=2e-3)

    out2_bf16 = jax.block_until_ready(causal_attention(x2, wq2, wk2, wv2))
    assert jnp.allclose(out2_bf16, ref2, atol=3e-2, rtol=3e-2)

    print("KERNEL_OK")
</pallas_src>

<mosaic_0001>
module attributes {stable_mosaic.version = 11 : i64} {
  func.func @_qkv_proj_kernel(%arg0: i32, %arg1: i32, %arg2: memref<1x6x3xf32, #tpu.memory_space<vmem>>, %arg3: memref<3x6xf32, #tpu.memory_space<vmem>>, %arg4: memref<1x6x2xf32, #tpu.memory_space<vmem>>, %arg5: memref<1x6x2xf32, #tpu.memory_space<vmem>>, %arg6: memref<1x6x2xf32, #tpu.memory_space<vmem>>) attributes {dimension_semantics = [#tpu.dimension_semantics<parallel>, #tpu.dimension_semantics<parallel>], iteration_bounds = array<i64: 2, 1>, scalar_prefetch = 0 : i64, scratch_operands = 0 : i64, tpu.core_type = #tpu.core_type<tc>, window_params = [{transform_indices = @transform_0, window_bounds = array<i64: 1, 6, 3>}, {pipeline_mode = #tpu.pipeline_mode<synchronous>, transform_indices = @transform_1, window_bounds = array<i64: 3, 6>}, {transform_indices = @transform_2, window_bounds = array<i64: 1, 6, 2>}, {transform_indices = @transform_3, window_bounds = array<i64: 1, 6, 2>}, {transform_indices = @transform_4, window_bounds = array<i64: 1, 6, 2>}]} {
    %c0 = arith.constant 0 : index
    %c0_0 = arith.constant 0 : index
    %c0_1 = arith.constant 0 : index
    %0 = vector.load %arg2[%c0, %c0_0, %c0_1] : memref<1x6x3xf32, #tpu.memory_space<vmem>>, vector<1x6x3xf32>
    %1 = vector.shape_cast %0 : vector<1x6x3xf32> to vector<6x3xf32>
    %c0_2 = arith.constant 0 : index
    %c0_3 = arith.constant 0 : index
    %2 = vector.load %arg3[%c0_2, %c0_3] : memref<3x6xf32, #tpu.memory_space<vmem>>, vector<3x6xf32>
    %cst = arith.constant dense<0.000000e+00> : vector<6x6xf32>
    %3 = tpu.matmul %1, %2, %cst {dimension_numbers = #tpu.dot_dimension_numbers<[1], [0], [0], [1], [0, 0, 1, 1], [], []>} : vector<6x3xf32>, vector<3x6xf32>, vector<6x6xf32> -> vector<6x6xf32>
    %4 = vector.extract_strided_slice %3 {offsets = [0, 0], sizes = [6, 2], strides = [1, 1]} : vector<6x6xf32> to vector<6x2xf32>
    %cst_4 = arith.constant 0.707106769 : f32
    %5 = vector.broadcast %cst_4 : f32 to vector<6x2xf32>
    %6 = arith.mulf %4, %5 : vector<6x2xf32>
    %c0_5 = arith.constant 0 : index
    %c0_6 = arith.constant 0 : index
    %c0_7 = arith.constant 0 : index
    %7 = vector.load %arg4[%c0_5, %c0_6, %c0_7] : memref<1x6x2xf32, #tpu.memory_space<vmem>>, vector<1x6x2xf32>
    %8 = vector.shape_cast %7 : vector<1x6x2xf32> to vector<6x2xf32>
    %9 = vector.shape_cast %6 : vector<6x2xf32> to vector<1x6x2xf32>
    tpu.vector_store %arg4[%c0_5, %c0_6, %c0_7], %9 {strides = array<i32>} : memref<1x6x2xf32, #tpu.memory_space<vmem>>, vector<1x6x2xf32>,
    %10 = vector.extract_strided_slice %3 {offsets = [0, 2], sizes = [6, 2], strides = [1, 1]} : vector<6x6xf32> to vector<6x2xf32>
    %c0_8 = arith.constant 0 : index
    %c0_9 = arith.constant 0 : index
    %c0_10 = arith.constant 0 : index
    %11 = vector.load %arg5[%c0_8, %c0_9, %c0_10] : memref<1x6x2xf32, #tpu.memory_space<vmem>>, vector<1x6x2xf32>
    %12 = vector.shape_cast %11 : vector<1x6x2xf32> to vector<6x2xf32>
    %13 = vector.shape_cast %10 : vector<6x2xf32> to vector<1x6x2xf32>
    tpu.vector_store %arg5[%c0_8, %c0_9, %c0_10], %13 {strides = array<i32>} : memref<1x6x2xf32, #tpu.memory_space<vmem>>, vector<1x6x2xf32>,
    %14 = vector.extract_strided_slice %3 {offsets = [0, 4], sizes = [6, 2], strides = [1, 1]} : vector<6x6xf32> to vector<6x2xf32>
    %c0_11 = arith.constant 0 : index
    %c0_12 = arith.constant 0 : index
    %c0_13 = arith.constant 0 : index
    %15 = vector.load %arg6[%c0_11, %c0_12, %c0_13] : memref<1x6x2xf32, #tpu.memory_space<vmem>>, vector<1x6x2xf32>
    %16 = vector.shape_cast %15 : vector<1x6x2xf32> to vector<6x2xf32>
    %17 = vector.shape_cast %14 : vector<6x2xf32> to vector<1x6x2xf32>
    tpu.vector_store %arg6[%c0_11, %c0_12, %c0_13], %17 {strides = array<i32>} : memref<1x6x2xf32, #tpu.memory_space<vmem>>, vector<1x6x2xf32>,
    return
  }
  func.func @transform_0(%arg0: i32, %arg1: i32) -> (i32, i32, i32) {
    %c0_i32 = arith.constant 0 : i32
    %c0_i32_0 = arith.constant 0 : i32
    return %arg0, %arg1, %c0_i32 : i32, i32, i32
  }
  func.func @transform_1(%arg0: i32, %arg1: i32) -> (i32, i32) {
    %c0_i32 = arith.constant 0 : i32
    %c0_i32_0 = arith.constant 0 : i32
    %c0_i32_1 = arith.constant 0 : i32
    return %c0_i32, %c0_i32_0 : i32, i32
  }
  func.func @transform_2(%arg0: i32, %arg1: i32) -> (i32, i32, i32) {
    %c0_i32 = arith.constant 0 : i32
    %c0_i32_0 = arith.constant 0 : i32
    return %arg0, %arg1, %c0_i32 : i32, i32, i32
  }
  func.func @transform_3(%arg0: i32, %arg1: i32) -> (i32, i32, i32) {
    %c0_i32 = arith.constant 0 : i32
    %c0_i32_0 = arith.constant 0 : i32
    return %arg0, %arg1, %c0_i32 : i32, i32, i32
  }
  func.func @transform_4(%arg0: i32, %arg1: i32) -> (i32, i32, i32) {
    %c0_i32 = arith.constant 0 : i32
    %c0_i32_0 = arith.constant 0 : i32
    return %arg0, %arg1, %c0_i32 : i32, i32, i32
  }
}

</mosaic_0001>

<bundles_post_ra>
// kernel: tpu_custom_call.1
= control target key start
LH: loop header
LB: loop body
LE: loop exit
PB: predicated region body
PF: predicated region fallthrough
CT: control target
= control target key end

     0   :  { %s549_s15 = smov 0   ;;  %s551_s16 = smov 0   ;;  %s591_s0 = inlined_call_operand.vmem [shape: f32[2,6,3], index: 0, kind: input, shape index: {}]   ;;  %s592_s1 = inlined_call_operand.vmem [shape: f32[3,6], index: 1, kind: input, shape index: {}]   ;;  %s593_s2 = inlined_call_operand.vmem [shape: f32[2,6,2], index: 2, kind: output, shape index: {0}]   ;;  %s594_s3 = inlined_call_operand.vmem [shape: f32[2,6,2], index: 3, kind: output, shape index: {1}]   ;;  %s595_s4 = inlined_call_operand.vmem [shape: f32[2,6,2], index: 4, kind: output, shape index: {2}]  }
   0x1   :  { %s553_s17 = smov 0  }
   0x2 LB: > { %s27_s18 = sadd.s32 1, %s516_s16  ;;  %p463_p0 = scmp.ge.s32.totalorder %s520_s17, 1  ;;  %s520_s17 = sphi %s553_s17, %s15_s17   ;;  %s516_s16 = sphi %s551_s16, %s597_s16   ;;  %s512_s15 = sphi %s549_s15, %s596_s15  }
   0x3   : > { %p29_p1 = scmp.ge.s32.totalorder %s27_s18, 2  ;;  %p189_p2 = scmp.lt.s32.totalorder %s520_s17, 3 }
   0x5   : > { %s599_s18 = smov (%p29_p1, %s27_s18), 0  ;;  %p190_p3 = pnand %p463_p0, %p189_p2 }
   0x6   : > { %p233_p4 = scmp.lt.s32.totalorder (!%p190_p3), %s512_s15, 1  ;;  %s522_s28 = smov (!%p190_p3), 126  }
   0x7   : > { %193 = sbr.rel (%p190_p3) target bundleno = 266 (0x10a), region = 28  ;;  %s523_s29 = smov (!%p190_p3), 124  }
   0xc   : > { %v262_v0 = vld [vmem:[%s592_s1] sm:$0x7]  ;;  %vm267_vm0 = vcmask 1042432   ;;  %s601_s15 = smov (!%p233_p4, %s512_s15), 1  ;;  %vm263_vm1 = vcmask 23552   ;;  %vm292_vm2 = vcmask 13312  }
   0xd   : > { %468 = vmatpush.msk.msra.mxu0 %vm267_vm0, %v262_v0  ;;  %s464_s21 = sshll.u32 %s601_s15, 3 }
   0xe   : > { %s239_s24 = scalar_lea.vmem %s591_s0, %s464_s21  ;;  %s246_s27 = scalar_lea.vmem %s593_s2, %s464_s21 }
   0xf   : > { %v261_v1 = vld [vmem:[%s239_s24] sm:$0x3f]  ;;  %s253_s6 = scalar_lea.vmem %s594_s3, %s464_s21  ;;  %s260_s9 = scalar_lea.vmem %s595_s4, %s464_s21 }
  0x10   : > { %469 = vmatmul.msk.f32.vlgmr.msra.gmra.mxu0 %vm263_vm1, %v261_v1 }
  0x8d   : > { %v288_v2 = vpop.f32.mrf.mxu0 }
  0x8e   : > { %v291_v3 = vmul.f32 0.70710677, %v288_v2  ;;  %295 = vrot.lane.b32.xlu0 %v288_v2, %s522_s28 }
  0x90   : > { %293 = vst.msk [vmem:[%s246_s27] sm:$0x3f] %vm292_vm2, %v291_v3 }
  0x96   : > { %299 = vrot.lane.b32.xlu0 %v288_v2, %s523_s29 }
 0x100   : > { %v296_v4 = vpop.permute.xlu0 %295 }
 0x101   : > { %298 = vst.msk [vmem:[%s253_s6] sm:$0x3f] %vm292_vm2, %v296_v4 }
 0x108   : > { %v300_v5 = vpop.permute.xlu0 %299 }
 0x109   : > { %302 = vst.msk [vmem:[%s260_s9] sm:$0x3f] %vm292_vm2, %v300_v5 }
 0x10a PF: > { %s15_s17 = sadd.s32 1, %s520_s17   ;;  %s596_s15 = smov %s516_s16 }
 0x10b   : > { %p12_p5 = scmp.ge.s32.totalorder %s15_s17, 4   ;;  %s597_s16 = smov %s599_s18 }
 0x10d   :  { %14 = sbr.rel (!%p12_p5) target bundleno = 2 (0x2), region = 82 }

</bundles_post_ra>
